<compile_context>
chip_gen: v7x
topology: tpu7x:2x2x1
jax: 0.10.0
libtpu: 0.0.40
codegen_flags: <defaults>
</compile_context>

<pallas_src>
import functools

import jax
import jax.numpy as jnp
import numpy as np
from jax import lax
from jax.experimental import pallas as pl
from jax.experimental.pallas import tpu as pltpu


def _dkd_kernel(ys_ref, yt_ref, tgt_ref, acc_ref, *, T, ignore_index):
    b = pl.program_id(1)                        # innermost (reduction) axis

    @pl.when(b == 0)
    def _():
        acc_ref[...] = jnp.zeros_like(acc_ref)

    inv_t = jnp.float32(1.0 / T)
    ss = ys_ref[0].astype(jnp.float32) * inv_t          # (C, TILE) student
    st = yt_ref[0].astype(jnp.float32) * inv_t          # (C, TILE) teacher
    tgt = tgt_ref[0]                                    # (1, TILE) int32

    valid = tgt != ignore_index
    valid_f = valid.astype(jnp.float32)
    tgt0 = jnp.where(valid, tgt, 0)                     # target[~valid] = 0

    c, tile = ss.shape
    cls = lax.broadcasted_iota(jnp.int32, (c, tile), 0)
    is_gt = cls == tgt0                                 # bool one-hot (C, TILE)

    # One shared shift for both softmaxes (exp(-m) cancels in every ratio and
    # in c_s - c_t below) — saves one class-axis (XLU) reduction per tile.
    m = jnp.max(jnp.maximum(ss, st), axis=0, keepdims=True)     # (1, TILE)
    e_s = jnp.exp(ss - m)                               # (C, TILE)
    e_t = jnp.exp(st - m)
    sum_s = jnp.sum(e_s, axis=0, keepdims=True)
    sum_t = jnp.sum(e_t, axis=0, keepdims=True)
    eg_s = jnp.sum(jnp.where(is_gt, e_s, 0.0), axis=0, keepdims=True)
    eg_t = jnp.sum(jnp.where(is_gt, e_t, 0.0), axis=0, keepdims=True)

    eps = jnp.float32(np.finfo(np.float32).eps)
    tiny = jnp.float32(1e-30)

    # ---- TCKD: binary (gt vs rest) KL per pixel ----------------------------
    inv_sum_s = pl.reciprocal(jnp.maximum(sum_s, tiny), approx=True)
    inv_sum_t = pl.reciprocal(jnp.maximum(sum_t, tiny), approx=True)
    pg_s = jnp.clip(eg_s * inv_sum_s, eps, 1.0 - eps)
    po_s = jnp.clip((sum_s - eg_s) * inv_sum_s, eps, 1.0 - eps)
    pg_t = jnp.clip(eg_t * inv_sum_t, eps, 1.0 - eps)
    po_t = jnp.clip((sum_t - eg_t) * inv_sum_t, eps, 1.0 - eps)
    tckd_pix = (pg_t * (jnp.log(pg_t) - jnp.log(pg_s))
                + po_t * (jnp.log(po_t) - jnp.log(po_s)))        # (1, TILE)

    # ---- NCKD: reuse e_s / e_t. The gt column drops out of the masked
    # softmax because exp(-mask_magnitude / T) underflows in f32 (guarded in
    # the wrapper), so the masked logsumexp is m + log(sum - e_gt).
    sn_s = jnp.maximum(sum_s - eg_s, tiny)
    sn_t = jnp.maximum(sum_t - eg_t, tiny)
    diff = (st - ss) + (jnp.log(sn_s) - jnp.log(sn_t))   # log_p2_t - log_p2_s
    nckd_num = jnp.sum(jnp.where(is_gt, 0.0, e_t) * diff,
                       axis=0, keepdims=True)
    nckd_pix = nckd_num * pl.reciprocal(sn_t, approx=True)       # (1, TILE)

    # Lane-wise partial sums accumulated into the packed per-tile block.
    acc_ref[0, 0:1, :] += tckd_pix * valid_f
    acc_ref[0, 1:2, :] += nckd_pix * valid_f
    acc_ref[0, 2:3, :] += valid_f


def dkd_loss(y_s, y_t, target, *, alpha=1.0, beta=2.0, T=1.0,
             mask_magnitude=1000.0, ignore_index=-1):
    """DKD.forward with resize_out=False (default): y_s, y_t are NCHW logits,
    target is (B, H, W) integer labels; ignore_index marks ignored pixels."""
    if float(mask_magnitude) / float(T) < 88.0:
        # TODO(synk): restore the exact masked log_softmax path for callers
        # where exp(-mask_magnitude/T) does not underflow in float32.
        raise NotImplementedError(
            "NCKD shortcut requires mask_magnitude / T >= 88 so that "
            "exp(-mask_magnitude/T) underflows in float32.")

    B, C, h, w = y_s.shape
    H, W = target.shape[1:]
    hw = h * w

    # F.interpolate(target, (h, w), mode='nearest') — gather glue in plain JAX.
    ri = jnp.floor(jnp.arange(h) * (H / h)).astype(jnp.int32)
    ci = jnp.floor(jnp.arange(w) * (W / w)).astype(jnp.int32)
    tgt = target[:, ri][:, :, ci].astype(jnp.int32).reshape(B, 1, hw)

    # Native layout: free reshape, pixels on lanes, classes on the reduce axis.
    ys3 = y_s.reshape(B, C, hw)
    yt3 = y_t.reshape(B, C, hw)
    in_bytes = ys3.dtype.itemsize

    # --- spatial tile sized from this generation's VMEM capacity ------------
    try:
        vmem_cap = int(pltpu.get_tpu_info().vmem_capacity_bytes)
    except Exception:
        vmem_cap = 64 * 1024 * 1024            # conservative (v7x per-TC)
    vmem_budget = vmem_cap * 3 // 4
    # Resident bytes per pixel column: pipelined input blocks (2 logit arrays
    # x 2 buffers), target / packed-output blocks (double-buffered), plus ~9
    # live (C, TILE) f32 intermediates materialized by the kernel body.
    per_col = (2 * 2 * C * in_bytes) + (2 * 1 * 4) + (2 * 3 * 4) + (36 * C)
    tile_cap = max(((vmem_budget // per_col) // 128) * 128, 128)

    hw128 = -(-hw // 128) * 128
    tile_max = max(min(tile_cap, 4096, hw128), 128)

    # Prefer the largest tile that divides the 128-padded extent (no padding
    # copy); otherwise take the largest VMEM-fitting tile and pad the tail.
    tile_hw, cand = 128, 128
    while cand <= tile_max:
        if hw128 % cand == 0:
            tile_hw = cand
        cand += 128
    if tile_hw < min(512, tile_max):
        tile_hw = tile_max

    num_tiles = -(-hw // tile_hw)
    hw_pad = num_tiles * tile_hw
    if hw_pad != hw:
        pad = hw_pad - hw
        ys3 = jnp.pad(ys3, ((0, 0), (0, 0), (0, pad)))
        yt3 = jnp.pad(yt3, ((0, 0), (0, 0), (0, pad)))
        tgt = jnp.pad(tgt, ((0, 0), (0, 0), (0, pad)),
                      constant_values=ignore_index)

    kernel = functools.partial(_dkd_kernel, T=float(T),
                               ignore_index=int(ignore_index))

    logit_spec = pl.BlockSpec((1, C, tile_hw), lambda t, b: (b, 0, t))
    tgt_spec = pl.BlockSpec((1, 1, tile_hw), lambda t, b: (b, 0, t))
    out_spec = pl.BlockSpec((1, 3, tile_hw), lambda t, b: (t, 0, 0))
    out_sd = jax.ShapeDtypeStruct((num_tiles, 3, tile_hw), jnp.float32)

    cost = pl.CostEstimate(
        flops=int(30 * B * C * hw_pad + 40 * B * hw_pad),
        transcendentals=int(2 * B * C * hw_pad + 9 * B * hw_pad),
        bytes_accessed=int(2 * B * C * hw_pad * in_bytes + B * hw_pad * 4
                           + num_tiles * 3 * tile_hw * 4))

    vmem_limit = int(min(vmem_cap * 7 // 8,
                         max(per_col * tile_hw + (8 << 20), 32 << 20)))

    acc = pl.pallas_call(
        kernel,
        grid=(num_tiles, B),
        in_specs=[logit_spec, logit_spec, tgt_spec],
        out_specs=out_spec,
        out_shape=out_sd,
        compiler_params=pltpu.CompilerParams(
            dimension_semantics=("parallel", "arbitrary"),
            vmem_limit_bytes=vmem_limit),
        cost_estimate=cost,
    )(ys3, yt3, tgt)

    sums = jnp.sum(acc, axis=(0, 2))            # (3,): tckd, nckd, num_valid
    nv = sums[2]
    denom = jnp.maximum(nv, 1.0)
    tckd = sums[0] / denom * (T ** 2)
    nckd = sums[1] / denom * (T ** 2)
    loss = alpha * tckd + beta * nckd
    # TODO(synk): train_info / meta_info bookkeeping (entropy, logit stats,
    # num_inf) and the optional dist_intra_weight branch are diagnostics only
    # and are not part of the returned loss.
    # num_valid == 0 branch of the reference: loss = 0 * y_s.sum()
    return jnp.where(nv > 0, loss, 0.0)


# ----------------------------- pure-JAX reference -----------------------------
def dkd_loss_ref(y_s, y_t, target, *, alpha, beta, T, mask_magnitude,
                 ignore_index):
    B, C, h, w = y_s.shape
    H, W = target.shape[1:]
    ri = jnp.floor(jnp.arange(h) * (H / h)).astype(jnp.int32)
    ci = jnp.floor(jnp.arange(w) * (W / w)).astype(jnp.int32)
    tgt = target[:, ri][:, :, ci].reshape(-1)
    ys = jnp.transpose(y_s, (0, 2, 3, 1)).reshape(-1, C).astype(jnp.float32)
    yt = jnp.transpose(y_t, (0, 2, 3, 1)).reshape(-1, C).astype(jnp.float32)
    valid = tgt != ignore_index
    t0 = jnp.where(valid, tgt, 0)
    nv = valid.sum().astype(jnp.float32)
    gt = jax.nn.one_hot(t0, C, dtype=jnp.float32)
    p_s = jax.nn.softmax(ys / T, axis=1)
    p_t = jax.nn.softmax(yt / T, axis=1)
    eps = jnp.finfo(jnp.float32).eps

    def binp(p):
        pg = (p * gt).sum(1)
        po = (p * (1.0 - gt)).sum(1)
        return jnp.clip(pg, eps, 1 - eps), jnp.clip(po, eps, 1 - eps)

    pg_s, po_s = binp(p_s)
    pg_t, po_t = binp(p_t)
    tckd = ((pg_t * (jnp.log(pg_t) - jnp.log(pg_s))
             + po_t * (jnp.log(po_t) - jnp.log(po_s))) * valid).sum() / nv * T ** 2
    lp2_s = jax.nn.log_softmax(ys / T - mask_magnitude * gt, axis=1)
    lp2_t = jax.nn.log_softmax(yt / T - mask_magnitude * gt, axis=1)
    nckd = ((jnp.exp(lp2_t) * (lp2_t - lp2_s)).sum(1) * valid).sum() / nv * T ** 2
    return alpha * tckd + beta * nckd


if __name__ == "__main__":
    key = jax.random.PRNGKey(0)
    k1, k2, k3 = jax.random.split(key, 3)

    B, C, h, w = 2, 16, 16, 16       # student/teacher logits: (B, C, h, w)
    H, W = 32, 32                    # label-map resolution
    alpha, beta, mask_magnitude, ignore_index = 1.0, 2.0, 1000.0, -1

    # bf16 logits end-to-end (halves HBM traffic); in-kernel math is f32.
    y_s = jax.random.normal(k1, (B, C, h, w), jnp.float32).astype(jnp.bfloat16)
    y_t = jax.random.normal(k2, (B, C, h, w), jnp.float32).astype(jnp.bfloat16)
    target = jax.random.randint(k3, (B, H, W), 0, C, jnp.int32)
    target = target.at[:, :3, :].set(ignore_index)   # some ignored pixels

    for T in (1.0, 2.0):
        loss = dkd_loss(y_s, y_t, target, alpha=alpha, beta=beta, T=T,
                        mask_magnitude=mask_magnitude,
                        ignore_index=ignore_index)
        loss = jax.block_until_ready(loss)
        ref = dkd_loss_ref(y_s, y_t, target, alpha=alpha, beta=beta, T=T,
                           mask_magnitude=mask_magnitude,
                           ignore_index=ignore_index)
        # Tolerance covers the EUP approximate reciprocals used in-kernel.
        np.testing.assert_allclose(np.asarray(loss), np.asarray(ref),
                                   rtol=5e-3, atol=5e-4)
    print("KERNEL_OK")
</pallas_src>

<mosaic_0001>
module attributes {stable_mosaic.version = 11 : i64} {
  func.func @_dkd_kernel(%arg0: i32, %arg1: i32, %arg2: memref<1x16x256xbf16, #tpu.memory_space<vmem>>, %arg3: memref<1x16x256xbf16, #tpu.memory_space<vmem>>, %arg4: memref<1x1x256xi32, #tpu.memory_space<vmem>>, %arg5: memref<1x3x256xf32, #tpu.memory_space<vmem>>) attributes {dimension_semantics = [#tpu.dimension_semantics<parallel>, #tpu.dimension_semantics<arbitrary>], iteration_bounds = array<i64: 1, 2>, scalar_prefetch = 0 : i64, scratch_operands = 0 : i64, tpu.core_type = #tpu.core_type<tc>, window_params = [{transform_indices = @transform_0, window_bounds = array<i64: 1, 16, 256>}, {transform_indices = @transform_1, window_bounds = array<i64: 1, 16, 256>}, {transform_indices = @transform_2, window_bounds = array<i64: 1, 1, 256>}, {transform_indices = @transform_3, window_bounds = array<i64: 1, 3, 256>}]} {
    %c0_i32 = arith.constant 0 : i32
    %0 = arith.cmpi eq, %arg1, %c0_i32 : i32
    %1 = arith.extui %0 : i1 to i32
    %c0_i32_0 = arith.constant 0 : i32
    %2 = arith.cmpi ne, %1, %c0_i32_0 : i32
    scf.if %2 {
      %cst_52 = arith.constant 0.000000e+00 : f32
      %125 = vector.broadcast %cst_52 : f32 to vector<1x3x256xf32>
      %c0_53 = arith.constant 0 : index
      %c0_54 = arith.constant 0 : index
      %c0_55 = arith.constant 0 : index
      %126 = vector.load %arg5[%c0_53, %c0_54, %c0_55] : memref<1x3x256xf32, #tpu.memory_space<vmem>>, vector<1x3x256xf32>
      tpu.vector_store %arg5[%c0_53, %c0_54, %c0_55], %125 {strides = array<i32>} : memref<1x3x256xf32, #tpu.memory_space<vmem>>, vector<1x3x256xf32>,
    } else {
    }
    %c0 = arith.constant 0 : index
    %c0_1 = arith.constant 0 : index
    %c0_2 = arith.constant 0 : index
    %3 = vector.load %arg2[%c0, %c0_1, %c0_2] : memref<1x16x256xbf16, #tpu.memory_space<vmem>>, vector<1x16x256xbf16>
    %4 = vector.shape_cast %3 : vector<1x16x256xbf16> to vector<16x256xbf16>
    %5 = arith.extf %4 : vector<16x256xbf16> to vector<16x256xf32>
    %cst = arith.constant 1.000000e+00 : f32
    %6 = vector.broadcast %cst : f32 to vector<16x256xf32>
    %7 = arith.mulf %5, %6 : vector<16x256xf32>
    %c0_3 = arith.constant 0 : index
    %c0_4 = arith.constant 0 : index
    %c0_5 = arith.constant 0 : index
    %8 = vector.load %arg3[%c0_3, %c0_4, %c0_5] : memref<1x16x256xbf16, #tpu.memory_space<vmem>>, vector<1x16x256xbf16>
    %9 = vector.shape_cast %8 : vector<1x16x256xbf16> to vector<16x256xbf16>
    %10 = arith.extf %9 : vector<16x256xbf16> to vector<16x256xf32>
    %cst_6 = arith.constant 1.000000e+00 : f32
    %11 = vector.broadcast %cst_6 : f32 to vector<16x256xf32>
    %12 = arith.mulf %10, %11 : vector<16x256xf32>
    %c0_7 = arith.constant 0 : index
    %c0_8 = arith.constant 0 : index
    %c0_9 = arith.constant 0 : index
    %13 = vector.load %arg4[%c0_7, %c0_8, %c0_9] : memref<1x1x256xi32, #tpu.memory_space<vmem>>, vector<1x1x256xi32>
    %14 = vector.shape_cast %13 : vector<1x1x256xi32> to vector<1x256xi32>
    %c-1_i32 = arith.constant -1 : i32
    %15 = vector.broadcast %c-1_i32 : i32 to vector<1x256xi32>
    %16 = arith.cmpi ne, %14, %15 : vector<1x256xi32>
    %17 = arith.extui %16 : vector<1x256xi1> to vector<1x256xi32>
    %18 = arith.sitofp %17 : vector<1x256xi32> to vector<1x256xf32>
    %c0_i32_10 = arith.constant 0 : i32
    %19 = vector.broadcast %c0_i32_10 : i32 to vector<1x256xi32>
    %20 = arith.select %16, %14, %19 : vector<1x256xi1>, vector<1x256xi32>
    %21 = tpu.iota {dimensions = array<i32: 0>} : vector<16x256xi32>
    %22 = vector.broadcast %20 : vector<1x256xi32> to vector<16x256xi32>
    %23 = arith.cmpi eq, %21, %22 : vector<16x256xi32>
    %24 = arith.maximumf %7, %12 : vector<16x256xf32>
    %cst_11 = arith.constant dense<0xFF800000> : vector<256xf32>
    %25 = vector.multi_reduction <maximumf>, %24, %cst_11 [0] : vector<16x256xf32> to vector<256xf32>
    %26 = vector.shape_cast %25 : vector<256xf32> to vector<1x256xf32>
    %27 = vector.broadcast %26 : vector<1x256xf32> to vector<16x256xf32>
    %28 = arith.subf %7, %27 : vector<16x256xf32>
    %29 = math.exp %28 : vector<16x256xf32>
    %30 = vector.broadcast %26 : vector<1x256xf32> to vector<16x256xf32>
    %31 = arith.subf %12, %30 : vector<16x256xf32>
    %32 = math.exp %31 : vector<16x256xf32>
    %cst_12 = arith.constant dense<0.000000e+00> : vector<256xf32>
    %33 = vector.multi_reduction <add>, %29, %cst_12 [0] : vector<16x256xf32> to vector<256xf32>
    %34 = vector.shape_cast %33 : vector<256xf32> to vector<1x256xf32>
    %cst_13 = arith.constant dense<0.000000e+00> : vector<256xf32>
    %35 = vector.multi_reduction <add>, %32, %cst_13 [0] : vector<16x256xf32> to vector<256xf32>
    %36 = vector.shape_cast %35 : vector<256xf32> to vector<1x256xf32>
    %cst_14 = arith.constant 0.000000e+00 : f32
    %37 = vector.broadcast %cst_14 : f32 to vector<16x256xf32>
    %38 = arith.select %23, %29, %37 : vector<16x256xi1>, vector<16x256xf32>
    %cst_15 = arith.constant dense<0.000000e+00> : vector<256xf32>
    %39 = vector.multi_reduction <add>, %38, %cst_15 [0] : vector<16x256xf32> to vector<256xf32>
    %40 = vector.shape_cast %39 : vector<256xf32> to vector<1x256xf32>
    %cst_16 = arith.constant 0.000000e+00 : f32
    %41 = vector.broadcast %cst_16 : f32 to vector<16x256xf32>
    %42 = arith.select %23, %32, %41 : vector<16x256xi1>, vector<16x256xf32>
    %cst_17 = arith.constant dense<0.000000e+00> : vector<256xf32>
    %43 = vector.multi_reduction <add>, %42, %cst_17 [0] : vector<16x256xf32> to vector<256xf32>
    %44 = vector.shape_cast %43 : vector<256xf32> to vector<1x256xf32>
    %cst_18 = arith.constant 1.000000e-30 : f32
    %45 = vector.broadcast %cst_18 : f32 to vector<1x256xf32>
    %46 = arith.maximumf %34, %45 : vector<1x256xf32>
    %47 = tpu.reciprocal %46 {approx = true} : vector<1x256xf32> -> vector<1x256xf32>
    %cst_19 = arith.constant 1.000000e-30 : f32
    %48 = vector.broadcast %cst_19 : f32 to vector<1x256xf32>
    %49 = arith.maximumf %36, %48 : vector<1x256xf32>
    %50 = tpu.reciprocal %49 {approx = true} : vector<1x256xf32> -> vector<1x256xf32>
    %51 = arith.mulf %40, %47 : vector<1x256xf32>
    %cst_20 = arith.constant 1.000000e+00 : f32
    %cst_21 = arith.constant 1.1920929E-7 : f32
    %52 = arith.subf %cst_20, %cst_21 : f32
    %cst_22 = arith.constant 1.1920929E-7 : f32
    %53 = vector.broadcast %cst_22 : f32 to vector<1x256xf32>
    %54 = arith.maximumf %53, %51 : vector<1x256xf32>
    %55 = vector.broadcast %52 : f32 to vector<1x256xf32>
    %56 = arith.minimumf %55, %54 : vector<1x256xf32>
    %57 = arith.subf %34, %40 : vector<1x256xf32>
    %58 = arith.mulf %57, %47 : vector<1x256xf32>
    %cst_23 = arith.constant 1.000000e+00 : f32
    %cst_24 = arith.constant 1.1920929E-7 : f32
    %59 = arith.subf %cst_23, %cst_24 : f32
    %cst_25 = arith.constant 1.1920929E-7 : f32
    %60 = vector.broadcast %cst_25 : f32 to vector<1x256xf32>
    %61 = arith.maximumf %60, %58 : vector<1x256xf32>
    %62 = vector.broadcast %59 : f32 to vector<1x256xf32>
    %63 = arith.minimumf %62, %61 : vector<1x256xf32>
    %64 = arith.mulf %44, %50 : vector<1x256xf32>
    %cst_26 = arith.constant 1.000000e+00 : f32
    %cst_27 = arith.constant 1.1920929E-7 : f32
    %65 = arith.subf %cst_26, %cst_27 : f32
    %cst_28 = arith.constant 1.1920929E-7 : f32
    %66 = vector.broadcast %cst_28 : f32 to vector<1x256xf32>
    %67 = arith.maximumf %66, %64 : vector<1x256xf32>
    %68 = vector.broadcast %65 : f32 to vector<1x256xf32>
    %69 = arith.minimumf %68, %67 : vector<1x256xf32>
    %70 = arith.subf %36, %44 : vector<1x256xf32>
    %71 = arith.mulf %70, %50 : vector<1x256xf32>
    %cst_29 = arith.constant 1.000000e+00 : f32
    %cst_30 = arith.constant 1.1920929E-7 : f32
    %72 = arith.subf %cst_29, %cst_30 : f32
    %cst_31 = arith.constant 1.1920929E-7 : f32
    %73 = vector.broadcast %cst_31 : f32 to vector<1x256xf32>
    %74 = arith.maximumf %73, %71 : vector<1x256xf32>
    %75 = vector.broadcast %72 : f32 to vector<1x256xf32>
    %76 = arith.minimumf %75, %74 : vector<1x256xf32>
    %77 = math.log %69 : vector<1x256xf32>
    %78 = math.log %56 : vector<1x256xf32>
    %79 = arith.subf %77, %78 : vector<1x256xf32>
    %80 = arith.mulf %69, %79 : vector<1x256xf32>
    %81 = math.log %76 : vector<1x256xf32>
    %82 = math.log %63 : vector<1x256xf32>
    %83 = arith.subf %81, %82 : vector<1x256xf32>
    %84 = arith.mulf %76, %83 : vector<1x256xf32>
    %85 = arith.addf %80, %84 : vector<1x256xf32>
    %86 = arith.subf %34, %40 : vector<1x256xf32>
    %cst_32 = arith.constant 1.000000e-30 : f32
    %87 = vector.broadcast %cst_32 : f32 to vector<1x256xf32>
    %88 = arith.maximumf %86, %87 : vector<1x256xf32>
    %89 = arith.subf %36, %44 : vector<1x256xf32>
    %cst_33 = arith.constant 1.000000e-30 : f32
    %90 = vector.broadcast %cst_33 : f32 to vector<1x256xf32>
    %91 = arith.maximumf %89, %90 : vector<1x256xf32>
    %92 = arith.subf %12, %7 : vector<16x256xf32>
    %93 = math.log %88 : vector<1x256xf32>
    %94 = math.log %91 : vector<1x256xf32>
    %95 = arith.subf %93, %94 : vector<1x256xf32>
    %96 = vector.broadcast %95 : vector<1x256xf32> to vector<16x256xf32>
    %97 = arith.addf %92, %96 : vector<16x256xf32>
    %cst_34 = arith.constant 0.000000e+00 : f32
    %98 = vector.broadcast %cst_34 : f32 to vector<16x256xf32>
    %99 = arith.select %23, %98, %32 : vector<16x256xi1>, vector<16x256xf32>
    %100 = arith.mulf %99, %97 : vector<16x256xf32>
    %cst_35 = arith.constant dense<0.000000e+00> : vector<256xf32>
    %101 = vector.multi_reduction <add>, %100, %cst_35 [0] : vector<16x256xf32> to vector<256xf32>
    %102 = vector.shape_cast %101 : vector<256xf32> to vector<1x256xf32>
    %103 = tpu.reciprocal %91 {approx = true} : vector<1x256xf32> -> vector<1x256xf32>
    %104 = arith.mulf %102, %103 : vector<1x256xf32>
    %c0_36 = arith.constant 0 : index
    %c0_37 = arith.constant 0 : index
    %c0_38 = arith.constant 0 : index
    %105 = vector.load %arg5[%c0_36, %c0_37, %c0_38] : memref<1x3x256xf32, #tpu.memory_space<vmem>>, vector<1x1x256xf32>
    %106 = vector.shape_cast %105 : vector<1x1x256xf32> to vector<1x256xf32>
    %107 = arith.mulf %85, %18 : vector<1x256xf32>
    %108 = arith.addf %106, %107 : vector<1x256xf32>
    %c0_39 = arith.constant 0 : index
    %c0_40 = arith.constant 0 : index
    %c0_41 = arith.constant 0 : index
    %109 = vector.load %arg5[%c0_39, %c0_40, %c0_41] : memref<1x3x256xf32, #tpu.memory_space<vmem>>, vector<1x1x256xf32>
    %110 = vector.shape_cast %109 : vector<1x1x256xf32> to vector<1x256xf32>
    %111 = vector.shape_cast %108 : vector<1x256xf32> to vector<1x1x256xf32>
    tpu.vector_store %arg5[%c0_39, %c0_40, %c0_41], %111 {strides = array<i32>} : memref<1x3x256xf32, #tpu.memory_space<vmem>>, vector<1x1x256xf32>,
    %c0_42 = arith.constant 0 : index
    %c1 = arith.constant 1 : index
    %c0_43 = arith.constant 0 : index
    %112 = vector.load %arg5[%c0_42, %c1, %c0_43] : memref<1x3x256xf32, #tpu.memory_space<vmem>>, vector<1x1x256xf32>
    %113 = vector.shape_cast %112 : vector<1x1x256xf32> to vector<1x256xf32>
    %114 = arith.mulf %104, %18 : vector<1x256xf32>
    %115 = arith.addf %113, %114 : vector<1x256xf32>
    %c0_44 = arith.constant 0 : index
    %c1_45 = arith.constant 1 : index
    %c0_46 = arith.constant 0 : index
    %116 = vector.load %arg5[%c0_44, %c1_45, %c0_46] : memref<1x3x256xf32, #tpu.memory_space<vmem>>, vector<1x1x256xf32>
    %117 = vector.shape_cast %116 : vector<1x1x256xf32> to vector<1x256xf32>
    %118 = vector.shape_cast %115 : vector<1x256xf32> to vector<1x1x256xf32>
    tpu.vector_store %arg5[%c0_44, %c1_45, %c0_46], %118 {strides = array<i32>} : memref<1x3x256xf32, #tpu.memory_space<vmem>>, vector<1x1x256xf32>,
    %c0_47 = arith.constant 0 : index
    %c2 = arith.constant 2 : index
    %c0_48 = arith.constant 0 : index
    %119 = vector.load %arg5[%c0_47, %c2, %c0_48] : memref<1x3x256xf32, #tpu.memory_space<vmem>>, vector<1x1x256xf32>
    %120 = vector.shape_cast %119 : vector<1x1x256xf32> to vector<1x256xf32>
    %121 = arith.addf %120, %18 : vector<1x256xf32>
    %c0_49 = arith.constant 0 : index
    %c2_50 = arith.constant 2 : index
    %c0_51 = arith.constant 0 : index
    %122 = vector.load %arg5[%c0_49, %c2_50, %c0_51] : memref<1x3x256xf32, #tpu.memory_space<vmem>>, vector<1x1x256xf32>
    %123 = vector.shape_cast %122 : vector<1x1x256xf32> to vector<1x256xf32>
    %124 = vector.shape_cast %121 : vector<1x256xf32> to vector<1x1x256xf32>
    tpu.vector_store %arg5[%c0_49, %c2_50, %c0_51], %124 {strides = array<i32>} : memref<1x3x256xf32, #tpu.memory_space<vmem>>, vector<1x1x256xf32>,
    return
  }
  func.func @transform_0(%arg0: i32, %arg1: i32) -> (i32, i32, i32) {
    %c0_i32 = arith.constant 0 : i32
    %c0_i32_0 = arith.constant 0 : i32
    return %arg1, %c0_i32, %arg0 : i32, i32, i32
  }
  func.func @transform_1(%arg0: i32, %arg1: i32) -> (i32, i32, i32) {
    %c0_i32 = arith.constant 0 : i32
    %c0_i32_0 = arith.constant 0 : i32
    return %arg1, %c0_i32, %arg0 : i32, i32, i32
  }
  func.func @transform_2(%arg0: i32, %arg1: i32) -> (i32, i32, i32) {
    %c0_i32 = arith.constant 0 : i32
    %c0_i32_0 = arith.constant 0 : i32
    return %arg1, %c0_i32, %arg0 : i32, i32, i32
  }
  func.func @transform_3(%arg0: i32, %arg1: i32) -> (i32, i32, i32) {
    %c0_i32 = arith.constant 0 : i32
    %c0_i32_0 = arith.constant 0 : i32
    %c0_i32_1 = arith.constant 0 : i32
    return %arg0, %c0_i32, %c0_i32_0 : i32, i32, i32
  }
}

</mosaic_0001>

<bundles_post_ra>
// kernel: tpu_custom_call.1
= control target key start
LH: loop header
LB: loop body
LE: loop exit
PB: predicated region body
PF: predicated region fallthrough
CT: control target
= control target key end

     0   :  { %8 = vsyncpa [#allocation3], 0  ;;  %s1388_s0 = inlined_call_operand.hbm [shape: bf16[2,16,256], index: 0, kind: input, shape index: {}]   ;;  %s1389_s1 = inlined_call_operand.hbm [shape: bf16[2,16,256], index: 1, kind: input, shape index: {}]   ;;  %s1390_s2 = inlined_call_operand.vmem [shape: s32[2,1,256], index: 2, kind: input, shape index: {}]   ;;  %s1391_s3 = inlined_call_operand.vmem [shape: f32[1,3,256], index: 3, kind: output, shape index: {}]  }
   0x1   :  { %10 = vsyncpa [#allocation3 + $0x1], 0 }
   0x2   :  { %11 = vsyncpa [#allocation5], 0 }
   0x3   :  { %13 = vsyncpa [#allocation5 + $0x1], 0  ;;  %s1005_s12 = smov 0   ;;  %s1007_s13 = smov 0  }
   0x4   :  { %s1009_s14 = smov 0   ;;  %s1011_s15 = smov 0  }
   0x5   :  { %s1013_s16 = smov 0   ;;  %s1015_s17 = smov 0  }
   0x6 LB: > { %s721_s18 = sadd.s32 4294967295, %s976_s17   ;;  %s28_s19 = sadd.s32 1, %s972_s16  ;;  %s976_s17 = sphi %s1015_s17, %s19_s17   ;;  %s972_s16 = sphi %s1013_s16, %s1404_s16   ;;  %s968_s15 = sphi %s1011_s15, %s1403_s15   ;;  %s964_s14 = sphi %s1009_s14, %s1402_s14   ;;  %s960_s13 = sphi %s1007_s13, %s1401_s13   ;;  %s956_s12 = sphi %s1005_s12, %s1400_s12  }
   0x7   : > { %p29_p0 = scmp.ge.s32.totalorder %s28_s19, 2  ;;  %s40_s20 = sadd.s32 1, %s964_s14 }
   0x8   : > { %p47_p1 = scmp.ne.s32.totalorder %s964_s14, %s960_s13  ;;  %p48_p2 = scmp.eq.s32.totalorder %s976_s17, 0 }
   0x9   : > { %s1406_s19 = smov (%p29_p0, %s28_s19), 0  ;;  %p53_p4 = scmp.ne.s32.totalorder %s960_s13, %s956_s12 }
   0xa   : > { %p1041_p3 = por %p48_p2, %p47_p1  ;;  %s35_s22 = ssub.s32 %s972_s16, %s1406_s19 }
   0xb   : > { %p54_p5 = scmp.eq.s32.totalorder %s721_s18, 0  ;;  %p38_p6 = scmp.eq.s32.totalorder %s35_s22, 0 }
   0xc   : > { %p756_p8 = scmp.lt.s32.totalorder %s976_s17, 2  ;;  %s1057_s25 = sand.u32 1, %s964_s14  }
   0xd   : > { %p1048_p7 = por %p54_p5, %p53_p4  ;;  %s743_s26 = sshll.u32 %s972_s16, 8 }
   0xe   : > { %s1054_s24 = scalar_select %p38_p6, %s964_s14, %s40_s20  }
   0xf   : > { %s1394_s23 = scalar_select %p1048_p7, 1, 0 }
  0x10   : > { %s724_s27 = sshll.u32 %s1057_s25, 4  ;;  %s1066_s30 = scalar_lea.hbm %s1388_s0, %s743_s26 }
  0x11   : > { %s163_s4 = scalar_lea.vmem [#allocation2], %s724_s27  ;;  %p1072_p9 = pnand %p756_p8, %p1041_p3 }
  0x12   : > { %s172_s5 = sshll.u32 %s163_s4, 4  ;;  %s160_s7 = scalar_lea.sflag [#allocation3], %s1057_s25  ;;  %s1076_s5 = int_to_ptr.vmem [resolvable:$true] %s172_s5 }
  0x13   : > { %s862_s8 = scalar_lea.hbm %s1066_s30, 256  ;;  %p864_p11 = pneg %p1072_p9 }
  0x14   : > { %p863_p10 = scmp.ne.s32.totalorder %s1066_s30, %s862_s8  ;;  %s867_s11 = scalar_lea.hbm %s1388_s0, 512 }
  0x15   : > { %p868_p0 = scmp.lt.u32.totalorder %s1066_s30, %s1388_s0  ;;  %p869_p1 = scmp.lt.u32.totalorder %s867_s11, %s862_s8 }
  0x16   : > { %p865_p12 = pnand %p864_p11, %p863_p10  ;;  %p871_p3 = scmp.lt.u32.totalorder %s862_s8, %s1066_s30 }
  0x17   : > { %p870_p2 = por %p869_p1, %p868_p0 }
  0x18   : > { %p866_p13 = pneg %p865_p12 }
  0x19   : > { %p872_p4 = por %p871_p3, %p870_p2 }
  0x1b   : > { %p873_p5 = pnand %p872_p4, %p866_p13 }
  0x1d   : > { %876 = shalt.err (!%p873_p5)
}
  0x1e   : > { %s877_s20 = scalar_lea.vmem %s1076_s5, 256  ;;  %s978_s21 = smov [#allocation2]  }
  0x1f   : > { %p878_p6 = scmp.ne.s32.totalorder %s1076_s5, %s877_s20  ;;  %s882_s22 = sshll.u32 %s978_s21, 4  ;;  %s883_s22 = int_to_ptr.vmem [resolvable:$false] %s882_s22 }
  0x20   : > { %s884_s28 = scalar_lea.vmem %s883_s22, 512  ;;  %p885_p12 = scmp.lt.s32.totalorder %s1076_s5, %s883_s22 }
  0x21   : > { %p880_p8 = pnand %p878_p6, %p864_p11  ;;  %p886_p0 = scmp.lt.s32.totalorder %s884_s28, %s877_s20 }
  0x23   : > { %p881_p10 = pneg %p880_p8  ;;  %p887_p1 = por %p886_p0, %p885_p12 }
  0x25   : > { %p888_p2 = pnand %p887_p1, %p881_p10 }
  0x27   : > { %891 = shalt.err (!%p888_p2)
}
  0x28   : > { %s979_s29 = smov 128   ;;  %s980_s4 = smov 8  }
  0x29   : > { %752 = dma.hbm_to_vmem [thread:$0]  (!%p1072_p9), %s1066_s30, 256, %s1076_s5, %s160_s7, %s979_s29, %s979_s29, %s980_s4  }
  0x2a   : > { %p730_p13 = scmp.ge.s32.totalorder %s976_s17, 1  ;;  %p215_p3 = scmp.lt.s32.totalorder %s976_s17, 3 }
  0x2b   : > { %s1120_s11 = scalar_lea.hbm %s1389_s1, %s743_s26  ;;  %s186_s12 = scalar_lea.vmem [#allocation4], %s724_s27 }
  0x2c   : > { %p1111_p4 = pnand %p730_p13, %p215_p3  ;;  %s195_s18 = sshll.u32 %s186_s12, 4  ;;  %s1124_s18 = int_to_ptr.vmem [resolvable:$true] %s195_s18 }
  0x2d   : > { %s183_s30 = scalar_lea.sflag [#allocation5], %s1057_s25  ;;  %s892_s5 = scalar_lea.hbm %s1120_s11, 256 }
  0x2e   : > { %p893_p5 = scmp.ne.s32.totalorder %s1120_s11, %s892_s5  ;;  %s897_s26 = scalar_lea.hbm %s1389_s1, 512 }
  0x2f   : > { %p898_p10 = scmp.lt.u32.totalorder %s1120_s11, %s1389_s1  ;;  %p899_p12 = scmp.lt.u32.totalorder %s897_s26, %s892_s5 }
  0x30   : > { %p895_p6 = pnand %p893_p5, %p864_p11  ;;  %p901_p1 = scmp.lt.u32.totalorder %s892_s5, %s1120_s11 }
  0x31   : > { %p900_p0 = por %p899_p12, %p898_p10 }
  0x32   : > { %p896_p8 = pneg %p895_p6 }
  0x33   : > { %p902_p2 = por %p901_p1, %p900_p0 }
  0x35   : > { %p903_p13 = pnand %p902_p2, %p896_p8 }
  0x37   : > { %906 = shalt.err (!%p903_p13)
}
  0x38   : > { %s907_s27 = scalar_lea.vmem %s1124_s18, 256  ;;  %s981_s28 = smov [#allocation4]  }
  0x39   : > { %p908_p3 = scmp.ne.s32.totalorder %s1124_s18, %s907_s27  ;;  %s912_s9 = sshll.u32 %s981_s28, 4  ;;  %s913_s9 = int_to_ptr.vmem [resolvable:$false] %s912_s9 }
  0x3a   : > { %s914_s10 = scalar_lea.vmem %s913_s9, 512  ;;  %p915_p7 = scmp.lt.s32.totalorder %s1124_s18, %s913_s9 }
  0x3b   : > { %p910_p5 = pnand %p908_p3, %p864_p11  ;;  %p916_p10 = scmp.lt.s32.totalorder %s914_s10, %s907_s27 }
  0x3d   : > { %p911_p6 = pneg %p910_p5  ;;  %p917_p12 = por %p916_p10, %p915_p7 }
  0x3f   : > { %p918_p0 = pnand %p917_p12, %p911_p6 }
  0x41   : > { %921 = shalt.err (!%p918_p0)
}
  0x42   : > { %755 = dma.hbm_to_vmem [thread:$0]  (!%p1072_p9), %s1120_s11, 256, %s1124_s18, %s183_s30, %s979_s29, %s979_s29, %s980_s4  }
  0x43   : > { %219 = sbr.rel (%p1111_p4) target bundleno = 195 (0xc3), region = 32  ;;  %s221_s12 = sand.u32 (!%p1111_p4), 1, %s960_s13  }
  0x44   : > { %s731_s5 = sshll.u32 (!%p1111_p4), %s221_s12, 4  ;;  %s222_s7 = scalar_lea.sflag (!%p1111_p4), [#allocation3], %s221_s12 }
  0x45   : > { %s225_s20 = scalar_lea.vmem (!%p1111_p4), [#allocation2], %s731_s5  ;;  %p1397_p7 = scmp.ne.s32.totalorder (!%p1111_p4), %s1394_s23, 0 }
  0x4a   : > { %947 = dma.done.wait (%p1397_p7), %s222_s7, 256  }
  0x4b   : > { %949 = vsyncadd (%p1397_p7), %s222_s7, 4294967040  ;;  %s231_s6 = scalar_lea.sflag [#allocation5], %s221_s12  ;;  %s234_s25 = scalar_lea.vmem [#allocation4], %s731_s5 }
  0x4c   : > { %951 = dma.done.wait (%p1397_p7), %s231_s6, 256  }
  0x4d   : > { %953 = vsyncadd (%p1397_p7), %s231_s6, 4294967040  ;;  %p273_p9 = scmp.lt.s32.totalorder %s968_s15, 1  ;;  %p734_p11 = scmp.ne.s32.totalorder %s968_s15, 0 }
  0x4e   : > { %v982_v0 = vmov (!%p734_p11), 0.0  }
  0x4f   : > { %s274_s29 = scalar_select %p273_p9, %s968_s15, 1 }
  0x50   : > { %289 = sbr.rel (%p734_p11) target bundleno = 87 (0x57), region = 44  ;;  %290 = vst [vmem:[%s1391_s3] sm:$0x77] (!%p734_p11), %v982_v0 }
  0x51   : > { %s733_s4 = sshll.u32 %s274_s29, 1 }
  0x52   : > { %s279_s18 = scalar_lea.vmem %s1390_s2, %s733_s4 }
  0x57 PF: > { %v291_v1 = vld [vmem:[%s225_s20] sm:$0xff]  ;;  %v292_v2 = vld [vmem:[%s225_s20 + $0x8] sm:$0xff]  ;;  %v308_v21 = vlaneseq  ;;  %v983_v26 = vmov 0.0  }
  0x58   : > { %v297_v3 = vld [vmem:[%s234_s25] sm:$0xff]  ;;  %v1175_v4 = vunpack.c.l.bf16 %v291_v1  ;;  %v1177_v5 = vunpack.c.h.bf16 %v291_v1  ;;  %v1179_v6 = vunpack.c.l.bf16 %v292_v2  ;;  %v1181_v7 = vunpack.c.h.bf16 %v292_v2  ;;  %v298_v8 = vld [vmem:[%s234_s25 + $0x8] sm:$0xff] }
  0x59   : > { %v1183_v9 = vunpack.c.l.bf16 %v297_v3  ;;  %v1185_v10 = vunpack.c.h.bf16 %v297_v3  ;;  %v1187_v11 = vunpack.c.l.bf16 %v298_v8  ;;  %v1189_v12 = vunpack.c.h.bf16 %v298_v8  ;;  %v303_v15 = vld [vmem:[%s279_s18] sm:$0x3]  ;;  %v738_v24 = vld [vmem:[%s1391_s3 + $0x2] ss:$4 sm:$0x3] }
  0x5a   : > { %vm304_vm0 = vcmp.ne.s32.totalorder %v303_v15, 4294967295  ;;  %vm1213_vm1 = vcmp.lt.s32.totalorder %v308_v21, 256  ;;  %v1223_v42 = vshrl.u32 %v308_v21, 7 }
  0x5b   : > { %v323_v13 = vmax.f32 %v1175_v4, %v1183_v9  ;;  %v324_v14 = vmax.f32 %v1177_v5, %v1185_v10  ;;  %v325_v16 = vmax.f32 %v1179_v6, %v1187_v11  ;;  %v326_v17 = vmax.f32 %v1181_v7, %v1189_v12 }
  0x5c   : > { %v495_v18 = vsub.f32 %v1183_v9, %v1175_v4  ;;  %v496_v19 = vsub.f32 %v1185_v10, %v1177_v5  ;;  %v497_v20 = vsub.f32 %v1187_v11, %v1179_v6  ;;  %v498_v23 = vsub.f32 %v1189_v12, %v1181_v7 }
  0x5d   : > { %v327_v22 = vmax.f32 %v323_v13, %v325_v16  ;;  %v334_v25 = vmax.f32 %v324_v14, %v326_v17  ;;  %v1211_v27 = vsel %vm304_vm0, 1.0, %v983_v26  ;;  %v313_v55 = vsub.s32 0, %v1223_v42 }
  0x5e   : > { %v603_v31 = vadd.f32 %v738_v24, %v1211_v27  ;;  %v307_v57 = vsel %vm304_vm0, %v303_v15, 0  ;;  %v317_v58 = vsub.s32 1, %v1223_v42  ;;  %v1245_v0 = vadd.s32 8, %v1223_v42 }
  0x5f   : > { %v328_v29 = vrot.slane %v327_v22, 4  ;;  %v335_v30 = vrot.slane %v334_v25, 4  ;;  %v1238_v62 = vrot.slane %v307_v57, %v313_v55 }
  0x60   : > { %739 = vst.msk [vmem:[%s1391_s3 + $0x2] ss:$4 sm:$0x3] %vm1213_vm1, %v603_v31  ;;  %v1242_v63 = vrot.slane %v307_v57, %v317_v58 }
  0x61   : > { %v329_v32 = vmax.f32 %v327_v22, %v328_v29  ;;  %v336_v33 = vmax.f32 %v334_v25, %v335_v30  ;;  %vm319_vm2 = vcmp.eq.s32.totalorder %v1223_v42, %v1238_v62  ;;  %vm321_vm4 = vcmp.eq.s32.totalorder %v1245_v0, %v1238_v62 }
  0x62   : > { %vm320_vm3 = vcmp.eq.s32.totalorder %v1223_v42, %v1242_v63  ;;  %vm322_vm5 = vcmp.eq.s32.totalorder %v1245_v0, %v1242_v63 }
  0x63   : > { %v330_v34 = vrot.slane %v329_v32, 2  ;;  %v337_v35 = vrot.slane %v336_v33, 2 }
  0x65   : > { %v331_v36 = vmax.f32 %v329_v32, %v330_v34  ;;  %v338_v37 = vmax.f32 %v336_v33, %v337_v35 }
  0x67   : > { %v332_v38 = vrot.slane %v331_v36, 1  ;;  %v339_v39 = vrot.slane %v338_v37, 1 }
  0x69   : > { %v333_v40 = vmax.f32 %v331_v36, %v332_v38  ;;  %v340_v41 = vmax.f32 %v338_v37, %v339_v39 }
  0x6b   : > { %v341_v43 = vsub.f32 %v1175_v4, %v333_v40  ;;  %v342_v44 = vsub.f32 %v1177_v5, %v340_v41  ;;  %v343_v45 = vsub.f32 %v1179_v6, %v333_v40  ;;  %v344_v46 = vsub.f32 %v1181_v7, %v340_v41 }
  0x6c   : > { %v353_v47 = vsub.f32 %v1183_v9, %v333_v40  ;;  %v354_v48 = vsub.f32 %v1185_v10, %v340_v41  ;;  %v355_v52 = vsub.f32 %v1187_v11, %v333_v40  ;;  %v356_v54 = vsub.f32 %v1189_v12, %v340_v41 }
  0x6d   : > { %v345_v49 = vmul.f32 1.442695, %v341_v43  ;;  %v347_v50 = vmul.f32 1.442695, %v342_v44  ;;  %v349_v51 = vmul.f32 1.442695, %v343_v45 }
  0x6e   : > { %v351_v53 = vmul.f32 1.442695, %v344_v46  ;;  %v357_v56 = vmul.f32 1.442695, %v353_v47  ;;  %v359_v59 = vmul.f32 1.442695, %v354_v48 }
  0x6f   : > { %810 = vpow2.f32 %v345_v49  ;;  %v361_v60 = vmul.f32 1.442695, %v355_v52  ;;  %v363_v61 = vmul.f32 1.442695, %v356_v54 }
  0x70   : > { %812 = vpow2.f32 %v347_v50 }
  0x71   : > { %814 = vpow2.f32 %v349_v51 }
  0x72   : > { %816 = vpow2.f32 %v351_v53 }
  0x73   : > { %818 = vpow2.f32 %v357_v56 }
  0x74   : > { %820 = vpow2.f32 %v359_v59 }
  0x75   : > { %822 = vpow2.f32 %v361_v60 }
  0x76   : > { %824 = vpow2.f32 %v363_v61 }
  0x79   : > { %v811_v1 = vpop.eup %810 }
  0x7a   : > { %v813_v2 = vpop.eup %812  ;;  %v393_v3 = vsel %vm319_vm2, %v811_v1, 0.0 }
  0x7b   : > { %v815_v8 = vpop.eup %814  ;;  %v394_v13 = vsel %vm320_vm3, %v813_v2, 0.0 }
  0x7c   : > { %v817_v14 = vpop.eup %816  ;;  %v365_v15 = vadd.f32 %v815_v8, %v811_v1  ;;  %v395_v16 = vsel %vm321_vm4, %v815_v8, 0.0 }
  0x7d   : > { %v1264_v17 = vpop.eup %818  ;;  %v372_v21 = vadd.f32 %v817_v14, %v813_v2  ;;  %v396_v22 = vsel %vm322_vm5, %v817_v14, 0.0  ;;  %v397_v24 = vadd.f32 %v395_v16, %v393_v3 }
  0x7e   : > { %v1269_v25 = vpop.eup %820  ;;  %v366_v26 = vrot.slane %v365_v15, 4  ;;  %v404_v29 = vadd.f32 %v396_v22, %v394_v13  ;;  %v411_v33 = vsel %vm319_vm2, %v1264_v17, 0.0 }
  0x7f   : > { %v1271_v30 = vpop.eup %822  ;;  %v373_v31 = vrot.slane %v372_v21, 4  ;;  %v398_v32 = vrot.slane %v397_v24, 4  ;;  %v412_v34 = vsel %vm320_vm3, %v1269_v25, 0.0 }
  0x80   : > { %v1281_v35 = vpop.eup %824  ;;  %v367_v36 = vadd.f32 %v366_v26, %v365_v15  ;;  %v379_v37 = vadd.f32 %v1271_v30, %v1264_v17  ;;  %v405_v38 = vrot.slane %v404_v29, 4  ;;  %v413_v39 = vsel %vm321_vm4, %v1271_v30, 0.0 }
  0x81   : > { %v374_v40 = vadd.f32 %v373_v31, %v372_v21  ;;  %v386_v41 = vadd.f32 %v1281_v35, %v1269_v25  ;;  %v399_v43 = vadd.f32 %v398_v32, %v397_v24  ;;  %v414_v44 = vsel %vm322_vm5, %v1281_v35, 0.0 }
  0x82   : > { %v368_v45 = vrot.slane %v367_v36, 2  ;;  %v380_v46 = vrot.slane %v379_v37, 4  ;;  %v406_v47 = vadd.f32 %v405_v38, %v404_v29  ;;  %v415_v48 = vadd.f32 %v413_v39, %v411_v33 }
  0x83   : > { %v375_v49 = vrot.slane %v374_v40, 2  ;;  %v387_v50 = vrot.slane %v386_v41, 4  ;;  %v400_v51 = vrot.slane %v399_v43, 2  ;;  %v422_v52 = vadd.f32 %v414_v44, %v412_v34 }
  0x84   : > { %v369_v53 = vadd.f32 %v368_v45, %v367_v36  ;;  %v381_v54 = vadd.f32 %v380_v46, %v379_v37  ;;  %v407_v56 = vrot.slane %v406_v47, 2  ;;  %v416_v57 = vrot.slane %v415_v48, 4 }
  0x85   : > { %v376_v59 = vadd.f32 %v375_v49, %v374_v40  ;;  %v388_v60 = vadd.f32 %v387_v50, %v386_v41  ;;  %v401_v61 = vadd.f32 %v400_v51, %v399_v43  ;;  %v423_v1 = vrot.slane %v422_v52, 4 }
  0x86   : > { %v370_v2 = vrot.slane %v369_v53, 1  ;;  %v382_v3 = vrot.slane %v381_v54, 2  ;;  %v408_v8 = vadd.f32 %v407_v56, %v406_v47  ;;  %v417_v13 = vadd.f32 %v416_v57, %v415_v48 }
  0x87   : > { %v377_v14 = vrot.slane %v376_v59, 1  ;;  %v389_v15 = vrot.slane %v388_v60, 2  ;;  %v402_v16 = vrot.slane %v401_v61, 1  ;;  %v424_v21 = vadd.f32 %v423_v1, %v422_v52 }
  0x88   : > { %v371_v22 = vadd.f32 %v370_v2, %v369_v53  ;;  %v383_v24 = vadd.f32 %v382_v3, %v381_v54  ;;  %v409_v26 = vrot.slane %v408_v8, 1  ;;  %v418_v29 = vrot.slane %v417_v13, 2 }
  0x89   : > { %v378_v31 = vadd.f32 %v377_v14, %v376_v59  ;;  %v390_v32 = vadd.f32 %v389_v15, %v388_v60  ;;  %v403_v33 = vadd.f32 %v402_v16, %v401_v61  ;;  %v425_v34 = vrot.slane %v424_v21, 2 }
  0x8a   : > { %v384_v36 = vrot.slane %v383_v24, 1  ;;  %v410_v37 = vadd.f32 %v409_v26, %v408_v8  ;;  %v419_v38 = vadd.f32 %v418_v29, %v417_v13  ;;  %v429_v39 = vmax.f32 %v371_v22, 1e-30 }
  0x8b   : > { %v391_v40 = vrot.slane %v390_v32, 1  ;;  %v426_v41 = vadd.f32 %v425_v34, %v424_v21  ;;  %v430_v43 = vmax.f32 %v378_v31, 1e-30  ;;  %v443_v44 = vsub.f32 %v371_v22, %v403_v33 }
  0x8c   : > { %v385_v45 = vadd.f32 %v384_v36, %v383_v24  ;;  %v420_v46 = vrot.slane %v419_v38, 1  ;;  %826 = vrcp.f32 %v429_v39  ;;  %v444_v47 = vsub.f32 %v378_v31, %v410_v37 }
  0x8d   : > { %v392_v48 = vadd.f32 %v391_v40, %v390_v32  ;;  %v427_v49 = vrot.slane %v426_v41, 1  ;;  %828 = vrcp.f32 %v430_v43  ;;  %v491_v50 = vmax.f32 %v443_v44, 1e-30 }
  0x8e   : > { %v421_v51 = vadd.f32 %v420_v46, %v419_v38  ;;  %v433_v52 = vmax.f32 %v385_v45, 1e-30  ;;  %v492_v53 = vmax.f32 %v444_v47, 1e-30 }
  0x8f   : > { %v428_v54 = vadd.f32 %v427_v49, %v426_v41  ;;  %v434_v56 = vmax.f32 %v392_v48, 1e-30  ;;  %830 = vlog2.f32 %v491_v50 }
  0x90   : > { %832 = vrcp.f32 %v433_v52  ;;  %v1295_v57 = vsub.f32 %v385_v45, %v421_v51 }
  0x91   : > { %834 = vrcp.f32 %v434_v56  ;;  %v1297_v59 = vsub.f32 %v392_v48, %v428_v54 }
  0x92   : > { %v493_v60 = vmax.f32 %v1295_v57, 1e-30  ;;  %836 = vlog2.f32 %v492_v53 }
  0x93   : > { %v494_v61 = vmax.f32 %v1297_v59, 1e-30 }
  0x94   : > { %838 = vlog2.f32 %v493_v60 }
  0x95   : > { %840 = vlog2.f32 %v494_v61 }
  0x96   : > { %v827_v1 = vpop.eup %826 }
  0x97   : > { %v829_v2 = vpop.eup %828  ;;  %v437_v3 = vmul.f32 %v827_v1, %v403_v33  ;;  %v445_v8 = vmul.f32 %v827_v1, %v443_v44 }
  0x98   : > { %v438_v13 = vmul.f32 %v829_v2, %v410_v37  ;;  %v446_v14 = vmul.f32 %v829_v2, %v444_v47  ;;  %v513_v2 = vsel %vm319_vm2, 0.0, %v1264_v17 }
  0x99   : > { %v831_v15 = vpop.eup %830  ;;  %v439_v16 = vmax.f32 %v437_v3, 1.1920929e-07  ;;  %v447_v21 = vmax.f32 %v445_v8, 1.1920929e-07  ;;  %v514_v8 = vsel %vm320_vm3, 0.0, %v1269_v25  ;;  %v516_v25 = vsel %vm322_vm5, 0.0, %v1281_v35 }
  0x9a   : > { %v833_v22 = vpop.eup %832  ;;  %v440_v24 = vmax.f32 %v438_v13, 1.1920929e-07  ;;  %v448_v26 = vmax.f32 %v446_v14, 1.1920929e-07  ;;  %v500_v44 = vmul.f32 0.6931472, %v831_v15  ;;  %v515_v13 = vsel %vm321_vm4, 0.0, %v1271_v30 }
  0x9b   : > { %v835_v29 = vpop.eup %834  ;;  %v441_v31 = vmin.f32 %v439_v16, 0.9999999  ;;  %v449_v32 = vmin.f32 %v447_v21, 0.9999999  ;;  %v451_v34 = vmul.f32 %v833_v22, %v421_v51  ;;  %v459_v36 = vmul.f32 %v833_v22, %v1295_v57 }
  0x9c   : > { %v837_v38 = vpop.eup %836  ;;  %v442_v39 = vmin.f32 %v440_v24, 0.9999999  ;;  %v450_v40 = vmin.f32 %v448_v26, 0.9999999  ;;  %v452_v41 = vmul.f32 %v835_v29, %v428_v54  ;;  %v460_v33 = vmul.f32 %v835_v29, %v1297_v59 }
  0x9d   : > { %v453_v37 = vmax.f32 %v451_v34, 1.1920929e-07  ;;  %v461_v43 = vmax.f32 %v459_v36, 1.1920929e-07  ;;  %842 = vlog2.f32 %v441_v31  ;;  %v502_v48 = vmul.f32 0.6931472, %v837_v38 }
  0x9e   : > { %v839_v45 = vpop.eup %838  ;;  %v454_v46 = vmax.f32 %v452_v41, 1.1920929e-07  ;;  %v462_v47 = vmax.f32 %v460_v33, 1.1920929e-07  ;;  %844 = vlog2.f32 %v442_v39  ;;  %v984_v39 = vmov 1966171168  }
  0x9f   : > { %v841_v49 = vpop.eup %840  ;;  %v455_v50 = vmin.f32 %v453_v37, 0.9999999  ;;  %v1307_v51 = vmin.f32 %v461_v43, 0.9999999  ;;  %846 = vlog2.f32 %v449_v32  ;;  %v504_v52 = vmul.f32 0.6931472, %v839_v45 }
  0xa0   : > { %v456_v53 = vmin.f32 %v454_v46, 0.9999999  ;;  %v1309_v56 = vmin.f32 %v462_v47, 0.9999999  ;;  %848 = vlog2.f32 %v450_v40  ;;  %v506_v54 = vmul.f32 0.6931472, %v841_v49 }
  0xa1   : > { %850 = vlog2.f32 %v455_v50  ;;  %v507_v1 = vsub.f32 %v500_v44, %v504_v52  ;;  %v557_v40 = vunpack.c.l.s4 %v984_v39  ;;  %v544_v49 = vrot.slane %v1211_v27, %v313_v55 }
  0xa2   : > { %852 = vlog2.f32 %v456_v53  ;;  %v508_v3 = vsub.f32 %v502_v48, %v506_v54 }
  0xa3   : > { %854 = vlog2.f32 %v1307_v51  ;;  %v509_v14 = vadd.f32 %v507_v1, %v495_v18  ;;  %v511_v17 = vadd.f32 %v507_v1, %v497_v20 }
  0xa4   : > { %856 = vlog2.f32 %v1309_v56  ;;  %v510_v62 = vadd.f32 %v508_v3, %v496_v19  ;;  %v512_v4 = vadd.f32 %v508_v3, %v498_v23 }
  0xa5   : > { %v517_v9 = vmul.f32 %v513_v2, %v509_v14  ;;  %v519_v18 = vmul.f32 %v515_v13, %v511_v17  ;;  %858 = vrcp.f32 %v493_v60  ;;  %v558_v2 = vunpack.c.0.s8 %v557_v40 }
  0xa6   : > { %v518_v30 = vmul.f32 %v514_v8, %v510_v62  ;;  %v520_v6 = vmul.f32 %v516_v25, %v512_v4  ;;  %860 = vrcp.f32 %v494_v61 }
  0xa7   : > { %v843_v11 = vpop.eup %842  ;;  %v521_v20 = vadd.f32 %v519_v18, %v517_v9  ;;  %v561_v25 = vsub.s32 %v558_v2, %v1223_v42  ;;  %v539_v18 = vld [vmem:[%s1391_s3] ss:$4 sm:$0x3] }
  0xa8   : > { %v845_v15 = vpop.eup %844  ;;  %v528_v16 = vadd.f32 %v520_v6, %v518_v30  ;;  %v470_v10 = vmul.f32 0.6931472, %v843_v11  ;;  %v736_v30 = vld [vmem:[%s1391_s3 + $0x1] ss:$4 sm:$0x3] }
  0xa9   : > { %v847_v63 = vpop.eup %846  ;;  %v522_v0 = vrot.slane %v521_v20, 4  ;;  %v472_v19 = vmul.f32 0.6931472, %v845_v15 }
  0xaa   : > { %v849_v5 = vpop.eup %848  ;;  %v529_v7 = vrot.slane %v528_v16, 4  ;;  %v482_v22 = vmul.f32 0.6931472, %v847_v63 }
  0xab   : > { %v851_v12 = vpop.eup %850  ;;  %v523_v23 = vadd.f32 %v522_v0, %v521_v20  ;;  %v484_v31 = vmul.f32 0.6931472, %v849_v5 }
  0xac   : > { %v853_v35 = vpop.eup %852  ;;  %v466_v21 = vmul.f32 0.6931472, %v851_v12  ;;  %v530_v24 = vadd.f32 %v529_v7, %v528_v16 }
  0xad   : > { %v855_v26 = vpop.eup %854  ;;  %v468_v29 = vmul.f32 0.6931472, %v853_v35  ;;  %v524_v57 = vrot.slane %v523_v23, 2 }
  0xae   : > { %v857_v60 = vpop.eup %856  ;;  %v473_v32 = vsub.f32 %v466_v21, %v470_v10  ;;  %v478_v34 = vmul.f32 0.6931472, %v855_v26  ;;  %v531_v36 = vrot.slane %v530_v24, 2 }
  0xaf   : > { %v474_v59 = vsub.f32 %v468_v29, %v472_v19  ;;  %v480_v61 = vmul.f32 0.6931472, %v857_v60  ;;  %v525_v38 = vadd.f32 %v524_v57, %v523_v23  ;;  %v859_v46 = vpop.eup %858 }
  0xb0   : > { %v475_v41 = vmul.f32 %v473_v32, %v455_v50  ;;  %v485_v33 = vsub.f32 %v478_v34, %v482_v22  ;;  %v532_v37 = vadd.f32 %v531_v36, %v530_v24  ;;  %v861_v52 = vpop.eup %860  ;;  %v548_v50 = vrot.slane %v1211_v27, %v317_v58 }
  0xb1   : > { %v476_v43 = vmul.f32 %v474_v59, %v456_v53  ;;  %v486_v44 = vsub.f32 %v480_v61, %v484_v31  ;;  %v526_v45 = vrot.slane %v525_v38, 1 }
  0xb2   : > { %v487_v47 = vmul.f32 %v485_v33, %v1307_v51  ;;  %v533_v48 = vrot.slane %v532_v37, 1 }
  0xb3   : > { %v488_v54 = vmul.f32 %v486_v44, %v1309_v56  ;;  %v527_v1 = vadd.f32 %v526_v45, %v525_v38 }
  0xb4   : > { %v489_v53 = vadd.f32 %v487_v47, %v475_v41  ;;  %v534_v3 = vadd.f32 %v533_v48, %v532_v37 }
  0xb5   : > { %v490_v8 = vadd.f32 %v488_v54, %v476_v43  ;;  %v537_v13 = vmul.f32 %v859_v46, %v527_v1 }
  0xb6   : > { %v538_v14 = vmul.f32 %v861_v52, %v534_v3  ;;  %v551_v51 = vmul.f32 %v544_v49, %v489_v53 }
  0xb7   : > { %v552_v17 = vmul.f32 %v548_v50, %v490_v8  ;;  %v579_v62 = vmul.f32 %v544_v49, %v537_v13 }
  0xb8   : > { %v580_v55 = vmul.f32 %v548_v50, %v538_v14 }
  0xb9   : > { %v555_v4 = vcombine.low %v551_v51, %v552_v17 }
  0xba   : > { %v583_v9 = vcombine.low %v579_v62, %v580_v55 }
  0xbb   : > { %v562_v56 = vrot.slane %v555_v4, %v561_v25 }
  0xbc   : > { %v590_v27 = vrot.slane %v583_v9, %v561_v25 }
  0xbd   : > { %v569_v58 = vrot.slane %v562_v56, %v561_v25 }
  0xbe   : > { %v597_v6 = vrot.slane %v590_v27, %v561_v25 }
  0xbf   : > { %v571_v11 = vadd.f32 %v569_v58, %v539_v18 }
  0xc0   : > { %v599_v20 = vadd.f32 %v736_v30, %v597_v6 }
  0xc1   : > { %576 = vst.msk [vmem:[%s1391_s3] ss:$4 sm:$0x3] %vm1213_vm1, %v571_v11 }
  0xc2   : > { %737 = vst.msk [vmem:[%s1391_s3 + $0x1] ss:$4 sm:$0x3] %vm1213_vm1, %v599_v20 }
  0xc3 PF: > { %s19_s17 = sadd.s32 1, %s976_s17   ;;  %s1400_s12 = smov %s960_s13 }
  0xc4   : > { %p16_p4 = scmp.ge.s32.totalorder %s19_s17, 4   ;;  %s1401_s13 = smov %s964_s14 }
  0xc5   : > { %s1402_s14 = smov %s1054_s24  ;;  %s1403_s15 = smov %s972_s16 }
  0xc6   : > { %s1404_s16 = smov %s1406_s19  ;;  %18 = sbr.rel (!%p16_p4) target bundleno = 6 (0x6), region = 94 }
  0xcd   :  { %626 = vsyncpa [#allocation3], 1 }
  0xce   :  { %628 = vsyncpa [#allocation3 + $0x1], 1 }
  0xcf   :  { %629 = vsyncpa [#allocation5], 1 }
  0xd0   :  { %631 = vsyncpa [#allocation5 + $0x1], 1 }

</bundles_post_ra>
